<compile_context>
chip_gen: v5e
topology: v5e:2x2
jax: 0.10.0
libtpu: 0.0.40
codegen_flags: <defaults>
</compile_context>

<pallas_src>
import math

import jax
import jax.numpy as jnp
from jax.experimental import pallas as pl
from jax.experimental.pallas import tpu as pltpu

_LANE = 128     # vreg lane width: feature dims padded to this
_SUBLANE = 8    # vreg sublane width: batch tile is a multiple of this


def _leaky_relu(x):
    # F.leaky_relu default negative_slope = 0.01
    return jnp.where(x > 0, x, 0.01 * x)


def _round_up(n, m):
    return ((n + m - 1) // m) * m


def actor_kernel(lim_ref,                                    # SMEM scalar
                 state_ref, w1_ref, b1_ref, w2_ref, b2_ref, w3_ref, b3_ref,
                 out_ref):
    lim = lim_ref[0]                                         # scalar f32
    x = state_ref[...]
    # x = leaky_relu(linear1(state))
    x = _leaky_relu(
        jnp.dot(x, w1_ref[...], preferred_element_type=jnp.float32)
        + b1_ref[...]
    )
    # x = leaky_relu(linear2(x))
    x = _leaky_relu(
        jnp.dot(x, w2_ref[...], preferred_element_type=jnp.float32)
        + b2_ref[...]
    )
    # action = tanh(linear3(x)) * lim   (tanh runs on the EUP slot)
    a = jnp.tanh(
        jnp.dot(x, w3_ref[...], preferred_element_type=jnp.float32)
        + b3_ref[...]
    )
    out_ref[...] = (a * lim).astype(out_ref.dtype)


def _init_linear(key, in_features, out_features):
    """PyTorch nn.Linear default init: U(-1/sqrt(fan_in), 1/sqrt(fan_in)).

    Returned in kernel layout: weight (in, out), bias (1, out).
    """
    kw, kb = jax.random.split(key)
    bound = 1.0 / math.sqrt(in_features)
    w = jax.random.uniform(
        kw, (out_features, in_features), jnp.float32, minval=-bound, maxval=bound
    )
    b = jax.random.uniform(
        kb, (out_features,), jnp.float32, minval=-bound, maxval=bound
    )
    return w.T, b[None, :]


def make_actor_params(key, state_size, hidden_size, action_size):
    """Unpadded params in kernel layout (used directly by the reference)."""
    h2 = hidden_size // 2
    k1, k2, k3 = jax.random.split(key, 3)
    w1, b1 = _init_linear(k1, state_size, hidden_size)
    w2, b2 = _init_linear(k2, hidden_size, h2)
    w3, b3 = _init_linear(k3, h2, action_size)
    return dict(w1=w1, b1=b1, w2=w2, b2=b2, w3=w3, b3=b3)


def _pad2d(x, rows, cols):
    return jnp.pad(x, ((0, rows - x.shape[0]), (0, cols - x.shape[1])))


def pad_actor_params(params):
    """Zero-pad feature dims to 128-lane multiples ONCE (kernel-side layout).

    The state feature dim (w1's input dim) is left unpadded so the raw state
    tensor can be fed to the kernel with no per-call layout op; zero padding
    elsewhere is numerically exact.
    """
    S, H = params["w1"].shape
    h2 = params["w2"].shape[1]
    A = params["w3"].shape[1]
    Hp = _round_up(H, _LANE)
    h2p = _round_up(h2, _LANE)
    Ap = _round_up(A, _LANE)
    return dict(
        w1=_pad2d(params["w1"], S, Hp),   b1=_pad2d(params["b1"], 1, Hp),
        w2=_pad2d(params["w2"], Hp, h2p), b2=_pad2d(params["b2"], 1, h2p),
        w3=_pad2d(params["w3"], h2p, Ap), b3=_pad2d(params["b3"], 1, Ap),
    )


def actor_forward(state, kparams, lim, action_size):
    """state: (B, stateSize) -> action: (B, actionSize). kparams = padded."""
    B, S = state.shape
    Hp = kparams["w1"].shape[1]
    h2p = kparams["w2"].shape[1]
    Ap = kparams["w3"].shape[1]

    # Large batch tile (multiple of 8 sublanes, capped at 512) to amortize
    # per-grid-step overhead; ragged last block is masked by Pallas.
    TB = min(512, _round_up(B, _SUBLANE))
    grid = (pl.cdiv(B, TB),)

    lim_arr = jnp.full((1,), lim, jnp.float32)   # runtime scalar, no recompile

    out = pl.pallas_call(
        actor_kernel,
        out_shape=jax.ShapeDtypeStruct((B, Ap), jnp.float32),
        grid_spec=pltpu.PrefetchScalarGridSpec(
            num_scalar_prefetch=0,
            grid=grid,
            in_specs=[
                pl.BlockSpec(memory_space=pltpu.MemorySpace.SMEM),  # lim scalar
                pl.BlockSpec((TB, S), lambda i: (i, 0)),   # state: blocked on batch
                pl.BlockSpec((S, Hp), lambda i: (0, 0)),   # weights/biases stay
                pl.BlockSpec((1, Hp), lambda i: (0, 0)),   # VMEM-resident across
                pl.BlockSpec((Hp, h2p), lambda i: (0, 0)), # the whole grid
                pl.BlockSpec((1, h2p), lambda i: (0, 0)),
                pl.BlockSpec((h2p, Ap), lambda i: (0, 0)),
                pl.BlockSpec((1, Ap), lambda i: (0, 0)),
            ],
            out_specs=pl.BlockSpec((TB, Ap), lambda i: (i, 0)),  # lane-dense store
        ),
        compiler_params=pltpu.CompilerParams(
            dimension_semantics=("parallel",),   # v7x: shard batch grid over 2 TCs
        ),
    )(lim_arr, state, kparams["w1"], kparams["b1"], kparams["w2"],
      kparams["b2"], kparams["w3"], kparams["b3"])

    # Padded action columns are exact zeros; drop them here.
    return out[:, :action_size]


def actor_reference(state, params, lim):
    """Pure-JAX reference mirroring the PyTorch forward (unpadded params)."""
    x = _leaky_relu(state @ params["w1"] + params["b1"])
    x = _leaky_relu(x @ params["w2"] + params["b2"])
    return jnp.tanh(x @ params["w3"] + params["b3"]) * lim


if __name__ == "__main__":
    state_size, hidden_size, action_size = 16, 32, 8
    lim = 2.0
    batch = 4

    key = jax.random.PRNGKey(0)
    k_params, k_state = jax.random.split(key)

    params = make_actor_params(k_params, state_size, hidden_size, action_size)
    kparams = pad_actor_params(params)          # one-time lane-dense layout
    state = jax.random.normal(k_state, (batch, state_size), jnp.float32)

    out = actor_forward(state, kparams, lim, action_size)
    out = jax.block_until_ready(out)

    ref = actor_reference(state, params, lim)
    assert out.shape == (batch, action_size), out.shape
    assert jnp.allclose(out, ref, atol=1e-5, rtol=1e-5), (out, ref)

    print("KERNEL_OK")
</pallas_src>

<mosaic_0001>
module attributes {stable_mosaic.version = 11 : i64} {
  func.func @actor_kernel(%arg0: i32, %arg1: memref<1xf32, #tpu.memory_space<smem>>, %arg2: memref<8x16xf32, #tpu.memory_space<vmem>>, %arg3: memref<16x128xf32, #tpu.memory_space<vmem>>, %arg4: memref<1x128xf32, #tpu.memory_space<vmem>>, %arg5: memref<128x128xf32, #tpu.memory_space<vmem>>, %arg6: memref<1x128xf32, #tpu.memory_space<vmem>>, %arg7: memref<128x128xf32, #tpu.memory_space<vmem>>, %arg8: memref<1x128xf32, #tpu.memory_space<vmem>>, %arg9: memref<8x128xf32, #tpu.memory_space<vmem>>) attributes {dimension_semantics = [#tpu.dimension_semantics<parallel>], iteration_bounds = array<i64: 1>, scalar_prefetch = 0 : i64, scratch_operands = 0 : i64, tpu.core_type = #tpu.core_type<tc>, window_params = [{transform_indices = @transform_0, window_bounds = array<i64: 1>}, {transform_indices = @transform_1, window_bounds = array<i64: 8, 16>}, {pipeline_mode = #tpu.pipeline_mode<synchronous>, transform_indices = @transform_2, window_bounds = array<i64: 16, 128>}, {pipeline_mode = #tpu.pipeline_mode<synchronous>, transform_indices = @transform_3, window_bounds = array<i64: 1, 128>}, {pipeline_mode = #tpu.pipeline_mode<synchronous>, transform_indices = @transform_4, window_bounds = array<i64: 128, 128>}, {pipeline_mode = #tpu.pipeline_mode<synchronous>, transform_indices = @transform_5, window_bounds = array<i64: 1, 128>}, {pipeline_mode = #tpu.pipeline_mode<synchronous>, transform_indices = @transform_6, window_bounds = array<i64: 128, 128>}, {pipeline_mode = #tpu.pipeline_mode<synchronous>, transform_indices = @transform_7, window_bounds = array<i64: 1, 128>}, {transform_indices = @transform_8, window_bounds = array<i64: 8, 128>}]} {
    %c0 = arith.constant 0 : index
    %0 = memref.load %arg1[%c0] : memref<1xf32, #tpu.memory_space<smem>>
    %c0_0 = arith.constant 0 : index
    %c0_1 = arith.constant 0 : index
    %1 = vector.load %arg2[%c0_0, %c0_1] : memref<8x16xf32, #tpu.memory_space<vmem>>, vector<8x16xf32>
    %c0_2 = arith.constant 0 : index
    %c0_3 = arith.constant 0 : index
    %2 = vector.load %arg3[%c0_2, %c0_3] : memref<16x128xf32, #tpu.memory_space<vmem>>, vector<16x128xf32>
    %cst = arith.constant dense<0.000000e+00> : vector<8x128xf32>
    %3 = tpu.matmul %1, %2, %cst {dimension_numbers = #tpu.dot_dimension_numbers<[1], [0], [0], [1], [0, 0, 1, 1], [], []>} : vector<8x16xf32>, vector<16x128xf32>, vector<8x128xf32> -> vector<8x128xf32>
    %c0_4 = arith.constant 0 : index
    %c0_5 = arith.constant 0 : index
    %4 = vector.load %arg4[%c0_4, %c0_5] : memref<1x128xf32, #tpu.memory_space<vmem>>, vector<1x128xf32>
    %5 = vector.broadcast %4 : vector<1x128xf32> to vector<8x128xf32>
    %6 = arith.addf %3, %5 : vector<8x128xf32>
    %cst_6 = arith.constant 0.000000e+00 : f32
    %7 = vector.broadcast %cst_6 : f32 to vector<8x128xf32>
    %8 = arith.cmpf ogt, %6, %7 : vector<8x128xf32>
    %cst_7 = arith.constant 0.00999999977 : f32
    %9 = vector.broadcast %cst_7 : f32 to vector<8x128xf32>
    %10 = arith.mulf %9, %6 : vector<8x128xf32>
    %11 = arith.select %8, %6, %10 : vector<8x128xi1>, vector<8x128xf32>
    %c0_8 = arith.constant 0 : index
    %c0_9 = arith.constant 0 : index
    %12 = vector.load %arg5[%c0_8, %c0_9] : memref<128x128xf32, #tpu.memory_space<vmem>>, vector<128x128xf32>
    %cst_10 = arith.constant dense<0.000000e+00> : vector<8x128xf32>
    %13 = tpu.matmul %11, %12, %cst_10 {dimension_numbers = #tpu.dot_dimension_numbers<[1], [0], [0], [1], [0, 0, 1, 1], [], []>} : vector<8x128xf32>, vector<128x128xf32>, vector<8x128xf32> -> vector<8x128xf32>
    %c0_11 = arith.constant 0 : index
    %c0_12 = arith.constant 0 : index
    %14 = vector.load %arg6[%c0_11, %c0_12] : memref<1x128xf32, #tpu.memory_space<vmem>>, vector<1x128xf32>
    %15 = vector.broadcast %14 : vector<1x128xf32> to vector<8x128xf32>
    %16 = arith.addf %13, %15 : vector<8x128xf32>
    %cst_13 = arith.constant 0.000000e+00 : f32
    %17 = vector.broadcast %cst_13 : f32 to vector<8x128xf32>
    %18 = arith.cmpf ogt, %16, %17 : vector<8x128xf32>
    %cst_14 = arith.constant 0.00999999977 : f32
    %19 = vector.broadcast %cst_14 : f32 to vector<8x128xf32>
    %20 = arith.mulf %19, %16 : vector<8x128xf32>
    %21 = arith.select %18, %16, %20 : vector<8x128xi1>, vector<8x128xf32>
    %c0_15 = arith.constant 0 : index
    %c0_16 = arith.constant 0 : index
    %22 = vector.load %arg7[%c0_15, %c0_16] : memref<128x128xf32, #tpu.memory_space<vmem>>, vector<128x128xf32>
    %cst_17 = arith.constant dense<0.000000e+00> : vector<8x128xf32>
    %23 = tpu.matmul %21, %22, %cst_17 {dimension_numbers = #tpu.dot_dimension_numbers<[1], [0], [0], [1], [0, 0, 1, 1], [], []>} : vector<8x128xf32>, vector<128x128xf32>, vector<8x128xf32> -> vector<8x128xf32>
    %c0_18 = arith.constant 0 : index
    %c0_19 = arith.constant 0 : index
    %24 = vector.load %arg8[%c0_18, %c0_19] : memref<1x128xf32, #tpu.memory_space<vmem>>, vector<1x128xf32>
    %25 = vector.broadcast %24 : vector<1x128xf32> to vector<8x128xf32>
    %26 = arith.addf %23, %25 : vector<8x128xf32>
    %27 = math.tanh %26 : vector<8x128xf32>
    %28 = vector.broadcast %0 : f32 to vector<8x128xf32>
    %29 = arith.mulf %27, %28 : vector<8x128xf32>
    %c0_20 = arith.constant 0 : index
    %c0_21 = arith.constant 0 : index
    %30 = vector.load %arg9[%c0_20, %c0_21] : memref<8x128xf32, #tpu.memory_space<vmem>>, vector<8x128xf32>
    tpu.vector_store %arg9[%c0_20, %c0_21], %29 {strides = array<i32>} : memref<8x128xf32, #tpu.memory_space<vmem>>, vector<8x128xf32>,
    return
  }
  func.func @transform_0(%arg0: i32) -> i32 {
    %c0_i32 = arith.constant 0 : i32
    %c0_i32_0 = arith.constant 0 : i32
    return %c0_i32 : i32
  }
  func.func @transform_1(%arg0: i32) -> (i32, i32) {
    %c0_i32 = arith.constant 0 : i32
    %c0_i32_0 = arith.constant 0 : i32
    return %arg0, %c0_i32 : i32, i32
  }
  func.func @transform_2(%arg0: i32) -> (i32, i32) {
    %c0_i32 = arith.constant 0 : i32
    %c0_i32_0 = arith.constant 0 : i32
    %c0_i32_1 = arith.constant 0 : i32
    return %c0_i32, %c0_i32_0 : i32, i32
  }
  func.func @transform_3(%arg0: i32) -> (i32, i32) {
    %c0_i32 = arith.constant 0 : i32
    %c0_i32_0 = arith.constant 0 : i32
    %c0_i32_1 = arith.constant 0 : i32
    return %c0_i32, %c0_i32_0 : i32, i32
  }
  func.func @transform_4(%arg0: i32) -> (i32, i32) {
    %c0_i32 = arith.constant 0 : i32
    %c0_i32_0 = arith.constant 0 : i32
    %c0_i32_1 = arith.constant 0 : i32
    return %c0_i32, %c0_i32_0 : i32, i32
  }
  func.func @transform_5(%arg0: i32) -> (i32, i32) {
    %c0_i32 = arith.constant 0 : i32
    %c0_i32_0 = arith.constant 0 : i32
    %c0_i32_1 = arith.constant 0 : i32
    return %c0_i32, %c0_i32_0 : i32, i32
  }
  func.func @transform_6(%arg0: i32) -> (i32, i32) {
    %c0_i32 = arith.constant 0 : i32
    %c0_i32_0 = arith.constant 0 : i32
    %c0_i32_1 = arith.constant 0 : i32
    return %c0_i32, %c0_i32_0 : i32, i32
  }
  func.func @transform_7(%arg0: i32) -> (i32, i32) {
    %c0_i32 = arith.constant 0 : i32
    %c0_i32_0 = arith.constant 0 : i32
    %c0_i32_1 = arith.constant 0 : i32
    return %c0_i32, %c0_i32_0 : i32, i32
  }
  func.func @transform_8(%arg0: i32) -> (i32, i32) {
    %c0_i32 = arith.constant 0 : i32
    %c0_i32_0 = arith.constant 0 : i32
    return %arg0, %c0_i32 : i32, i32
  }
}

</mosaic_0001>

<bundles_post_ra>
// kernel: tpu_custom_call.1
= control target key start
LH: loop header
LB: loop body
LE: loop exit
PB: predicated region body
PF: predicated region fallthrough
CT: control target
= control target key end

     0   :  { %14 = vsyncpa [#allocation4], 0  ;;  %s467_s0 = inlined_call_operand.<no memory space> [shape: f32[1], index: 0, kind: input, shape index: {}]   ;;  %s468_s1 = inlined_call_operand.hbm [shape: f32[4,16], index: 1, kind: input, shape index: {}]   ;;  %s469_s2 = inlined_call_operand.hbm [shape: f32[16,128], index: 2, kind: input, shape index: {}]   ;;  %s470_s3 = inlined_call_operand.vmem [shape: f32[1,128], index: 3, kind: input, shape index: {}]   ;;  %s471_s4 = inlined_call_operand.hbm [shape: f32[128,128], index: 4, kind: input, shape index: {}]   ;;  %s472_s5 = inlined_call_operand.vmem [shape: f32[1,128], index: 5, kind: input, shape index: {}]   ;;  %s473_s6 = inlined_call_operand.hbm [shape: f32[128,128], index: 6, kind: input, shape index: {}]   ;;  %s474_s7 = inlined_call_operand.vmem [shape: f32[1,128], index: 7, kind: input, shape index: {}]   ;;  %s475_s8 = inlined_call_operand.hbm [shape: f32[4,128], index: 8, kind: output, shape index: {}]  }
   0x1   :  { %15 = vsyncpa [#allocation7], 0 }
   0x2   :  { %16 = vsyncpa [#allocation10], 0 }
   0x3   :  { %17 = vsyncpa [#allocation5], 0  ;;  %s37_s29 = sshll.u32 %s469_s2, 4  ;;  %s38_s29 = int_to_ptr.hbm [resolvable:$true] %s37_s29 }
   0x4   :  { %23 = vsyncadd [#allocation4], 64  ;;  %s380_s30 = smov [#allocation6]   ;;  %s24_s12 = sshll.u32 %s468_s1, 4  ;;  %s25_s12 = int_to_ptr.hbm [resolvable:$true] %s24_s12 }
   0x5   :  { %s39_s9 = sshll.u32 %s380_s30, 4  ;;  %s381_s13 = smov 128   ;;  %s40_s9 = int_to_ptr.vmem [resolvable:$true] %s39_s9 }
   0x6   :  { %s382_s14 = smov 8   ;;  %s383_s15 = smov [#allocation3]  }
   0x7   :  { %45 = dma.hbm_to_vmem [thread:$0]  %s38_s29, 256, %s40_s9, [#allocation7], %s381_s13, %s381_s13, %s382_s14  }
   0x8   :  { %s26_s16 = sshll.u32 %s383_s15, 4  ;;  %s384_s17 = smov 64   ;;  %s27_s16 = int_to_ptr.vmem [resolvable:$true] %s26_s16 }
   0x9   :  { %s385_s18 = smov 4   ;;  %s52_s20 = sshll.u32 %s471_s4, 4  ;;  %s53_s20 = int_to_ptr.hbm [resolvable:$true] %s52_s20 }
   0xa   :  { %32 = dma.hbm_to_vmem [thread:$0]  %s25_s12, 64, %s27_s16, [#allocation4], %s384_s17, %s384_s17, %s385_s18  }
   0xb   :  { %s386_s21 = smov [#allocation8]   ;;  %s67_s24 = sshll.u32 %s473_s6, 4  ;;  %s68_s24 = int_to_ptr.hbm [resolvable:$true] %s67_s24 }
   0xc   :  { %s54_s1 = sshll.u32 %s386_s21, 4  ;;  %s387_s25 = smov [#allocation9]   ;;  %s55_s1 = int_to_ptr.vmem [resolvable:$true] %s54_s1 }
   0xd   :  { %60 = dma.hbm_to_vmem [thread:$0]  %s53_s20, 2048, %s55_s1, [#allocation7], %s381_s13, %s381_s13, %s382_s14  }
   0xe   :  { %s69_s26 = sshll.u32 %s387_s25, 4  ;;  %s70_s26 = int_to_ptr.vmem [resolvable:$true] %s69_s26 }
   0xf   :  { %75 = dma.hbm_to_vmem [thread:$0]  %s68_s24, 2048, %s70_s26, [#allocation10], %s381_s13, %s381_s13, %s382_s14  }
  0x10   :  { %372 = dma.done.wait [#allocation4], 128  }
  0x11   :  { %373 = vsyncadd [#allocation4], 4294967168 }
  0x12   :  { %374 = dma.done.wait [#allocation7], 2304  }
  0x13   :  { %375 = vsyncadd [#allocation7], 4294964992 }
  0x14   :  { %376 = dma.done.wait [#allocation10], 2048  }
  0x15   :  { %377 = vsyncadd [#allocation10], 4294965248  ;;  %v97_v0 = vld [vmem:[#allocation6 + $0x8] sm:$0xff]  ;;  %v96_v1 = vld [vmem:[#allocation6] sm:$0xff]  ;;  %vm102_vm0 = vcmask 130048   ;;  %v213_v48 = vstv %s467_s0 }
  0x16   :  { %120 = vmatpush.msra.mxu0 %v97_v0  ;;  %v95_v2 = vld [vmem:[#allocation3] sm:$0xff]  ;;  %v144_v3 = vld [vmem:[#allocation8 + $0x78] sm:$0xff]  ;;  %v143_v4 = vld [vmem:[#allocation8 + $0x70] sm:$0xff] }
  0x17   :  { %149 = vmatpush.msra.mxu1 %v144_v3  ;;  %v142_v5 = vld [vmem:[#allocation8 + $0x68] sm:$0xff]  ;;  %v141_v6 = vld [vmem:[#allocation8 + $0x60] sm:$0xff]  ;;  %v140_v7 = vld [vmem:[#allocation8 + $0x58] sm:$0xff] }
  0x18   :  { %121 = vmatpush.msra.mxu0 %v96_v1  ;;  %v139_v8 = vld [vmem:[#allocation8 + $0x50] sm:$0xff]  ;;  %v138_v9 = vld [vmem:[#allocation8 + $0x48] sm:$0xff]  ;;  %v137_v10 = vld [vmem:[#allocation8 + $0x40] sm:$0xff] }
  0x19   :  { %237 = vmatmul.msk.f32.vlgmr.msra.gmra.mxu0 %vm102_vm0, %v95_v2  ;;  %150 = vmatpush.msra.mxu1 %v143_v4  ;;  %v136_v11 = vld [vmem:[#allocation8 + $0x38] sm:$0xff]  ;;  %v135_v12 = vld [vmem:[#allocation8 + $0x30] sm:$0xff]  ;;  %v134_v13 = vld [vmem:[#allocation8 + $0x28] sm:$0xff] }
  0x1a   :  { %v133_v14 = vld [vmem:[#allocation8 + $0x20] sm:$0xff]  ;;  %v132_v15 = vld [vmem:[#allocation8 + $0x18] sm:$0xff]  ;;  %v131_v16 = vld [vmem:[#allocation8 + $0x10] sm:$0xff] }
  0x1b   :  { %151 = vmatpush.msra.mxu1 %v142_v5  ;;  %v130_v17 = vld [vmem:[#allocation8 + $0x8] sm:$0xff]  ;;  %v129_v18 = vld [vmem:[#allocation8] sm:$0xff]  ;;  %v187_v19 = vld [vmem:[#allocation9 + $0x78] sm:$0xff] }
  0x1c   :  { %v186_v20 = vld [vmem:[#allocation9 + $0x70] sm:$0xff]  ;;  %192 = vmatpush.msra.mxu2 %v187_v19  ;;  %v185_v21 = vld [vmem:[#allocation9 + $0x68] sm:$0xff]  ;;  %v184_v22 = vld [vmem:[#allocation9 + $0x60] sm:$0xff] }
  0x1d   :  { %152 = vmatpush.msra.mxu1 %v141_v6  ;;  %v183_v23 = vld [vmem:[#allocation9 + $0x58] sm:$0xff]  ;;  %v182_v24 = vld [vmem:[#allocation9 + $0x50] sm:$0xff]  ;;  %v181_v25 = vld [vmem:[#allocation9 + $0x48] sm:$0xff] }
  0x1e   :  { %193 = vmatpush.msra.mxu2 %v186_v20  ;;  %v180_v26 = vld [vmem:[#allocation9 + $0x40] sm:$0xff]  ;;  %v179_v27 = vld [vmem:[#allocation9 + $0x38] sm:$0xff]  ;;  %v178_v28 = vld [vmem:[#allocation9 + $0x30] sm:$0xff] }
  0x1f   :  { %153 = vmatpush.msra.mxu1 %v140_v7  ;;  %v177_v29 = vld [vmem:[#allocation9 + $0x28] sm:$0xff]  ;;  %v176_v30 = vld [vmem:[#allocation9 + $0x20] sm:$0xff]  ;;  %v175_v31 = vld [vmem:[#allocation9 + $0x18] sm:$0xff] }
  0x20   :  { %194 = vmatpush.msra.mxu2 %v185_v21  ;;  %v247_v32 = vld [vmem:[%s470_s3] ss:$0 sm:$0xff]  ;;  %v174_v37 = vld [vmem:[#allocation9 + $0x10] sm:$0xff]  ;;  %v172_v39 = vld [vmem:[#allocation9] sm:$0xff] }
  0x21   :  { %154 = vmatpush.msra.mxu1 %v139_v8  ;;  %v173_v38 = vld [vmem:[#allocation9 + $0x8] sm:$0xff] }
  0x22   :  { %195 = vmatpush.msra.mxu2 %v184_v22  ;;  %v248_v40 = vld [vmem:[%s472_s5] ss:$0 sm:$0xff] }
  0x23   :  { %155 = vmatpush.msra.mxu1 %v138_v9  ;;  %v249_v45 = vld [vmem:[%s474_s7] ss:$0 sm:$0xff] }
  0x24   :  { %196 = vmatpush.msra.mxu2 %v183_v23 }
  0x25   :  { %156 = vmatpush.msra.mxu1 %v137_v10 }
  0x26   :  { %197 = vmatpush.msra.mxu2 %v182_v24 }
  0x27   :  { %157 = vmatpush.msra.mxu1 %v136_v11 }
  0x28   :  { %198 = vmatpush.msra.mxu2 %v181_v25 }
  0x29   :  { %158 = vmatpush.msra.mxu1 %v135_v12 }
  0x2a   :  { %199 = vmatpush.msra.mxu2 %v180_v26 }
  0x2b   :  { %159 = vmatpush.msra.mxu1 %v134_v13 }
  0x2c   :  { %200 = vmatpush.msra.mxu2 %v179_v27 }
  0x2d   :  { %160 = vmatpush.msra.mxu1 %v133_v14 }
  0x2e   :  { %201 = vmatpush.msra.mxu2 %v178_v28 }
  0x2f   :  { %161 = vmatpush.msra.mxu1 %v132_v15 }
  0x30   :  { %202 = vmatpush.msra.mxu2 %v177_v29 }
  0x31   :  { %162 = vmatpush.msra.mxu1 %v131_v16 }
  0x32   :  { %203 = vmatpush.msra.mxu2 %v176_v30 }
  0x33   :  { %163 = vmatpush.msra.mxu1 %v130_v17 }
  0x34   :  { %204 = vmatpush.msra.mxu2 %v175_v31 }
  0x35   :  { %164 = vmatpush.msra.mxu1 %v129_v18 }
  0x36   :  { %205 = vmatpush.msra.mxu2 %v174_v37 }
  0x38   :  { %206 = vmatpush.msra.mxu2 %v173_v38 }
  0x3a   :  { %207 = vmatpush.msra.mxu2 %v172_v39 }
  0x96   :  { %v123_v33 = vpop.f32.mrf.mxu0 }
  0x97   :  { %v124_v34 = vadd.f32 %v247_v32, %v123_v33 }
  0x99   :  { %vm126_vm1 = vcmp.gt.f32.partialorder %v124_v34, 0.0  ;;  %v127_v35 = vmul.f32 0.01, %v124_v34 }
  0x9b   :  { %v128_v36 = vsel %vm126_vm1, %v124_v34, %v127_v35 }
  0x9c   :  { %165 = vmatmul.f32.vlgmr.msra.gmra.mxu1 %v128_v36 }
 0x119   :  { %v166_v41 = vpop.f32.mrf.mxu1 }
 0x11a   :  { %v167_v42 = vadd.f32 %v248_v40, %v166_v41 }
 0x11c   :  { %vm169_vm2 = vcmp.gt.f32.partialorder %v167_v42, 0.0  ;;  %v170_v43 = vmul.f32 0.01, %v167_v42 }
 0x11e   :  { %v171_v44 = vsel %vm169_vm2, %v167_v42, %v170_v43 }
 0x11f   :  { %208 = vmatmul.f32.vlgmr.msra.gmra.mxu2 %v171_v44 }
 0x1a2   :  { %v209_v46 = vpop.f32.mrf.mxu2 }
 0x1a3   :  { %v210_v47 = vadd.f32 %v249_v45, %v209_v46 }
 0x1a5   :  { %250 = vtanh.f32 %v210_v47 }
 0x1ab   :  { %v251_v49 = vpop.eup %250 }
 0x1ac   :  { %v214_v50 = vmul.f32 %v251_v49, %v213_v48 }
 0x1ae   :  { %215 = vst [vmem:[#allocation11] sm:$0xff] %v214_v50 }
 0x1af   :  { %219 = vsyncadd [#allocation5], 64  ;;  %s222_s11 = sshll.u32 %s475_s8, 4  ;;  %s388_s12 = smov [#allocation11]   ;;  %s223_s11 = int_to_ptr.hbm [resolvable:$true] %s222_s11 }
 0x1b0   :  { %s220_s13 = sshll.u32 %s388_s12, 4  ;;  %s221_s13 = int_to_ptr.vmem [resolvable:$true] %s220_s13 }
 0x1b1   :  { %228 = dma.vmem_to_hbm [thread:$0]  %s221_s13, 64, %s223_s11, [#allocation5], %s384_s17, %s384_s17, %s385_s18  }
 0x1b2   :  { %378 = dma.done.wait [#allocation5], 128  }
 0x1b3   :  { %379 = vsyncadd [#allocation5], 4294967168 }
 0x1b4   :  { %233 = vsyncpa [#allocation4], 1 }
 0x1b5   :  { %234 = vsyncpa [#allocation7], 1 }
 0x1b6   :  { %235 = vsyncpa [#allocation10], 1 }
 0x1b7   :  { %236 = vsyncpa [#allocation5], 1 }

</bundles_post_ra>
